<compile_context>
chip_gen: v7x
topology: tpu7x:2x2x1
jax: 0.10.0
libtpu: 0.0.40
codegen_flags: <defaults>
</compile_context>

<pallas_src>
import functools

import jax
import jax.numpy as jnp
import numpy as np
from jax.experimental import pallas as pl
from jax.experimental.pallas import tpu as pltpu

EPS = 1e-5

# Tap order matches the PyTorch/ref convention: index (dh+1)*3 + (dw+1).
_OFFSETS = tuple((dh, dw) for dh in (-1, 0, 1) for dw in (-1, 0, 1))


# ----------------------------------------------------------------------------
# One-time probe of pltpu.roll's rotation convention (defensive; cached).
# ----------------------------------------------------------------------------
@functools.lru_cache(maxsize=1)
def _roll_matches_jnp():
    """True iff pltpu.roll(x, k, axis) == jnp.roll(x, k, axis) on this backend."""
    x = np.arange(8 * 256, dtype=np.float32).reshape(8, 256)

    def _kernel(x_ref, o_ref):
        o_ref[...] = pltpu.roll(x_ref[...], 1, axis=1)

    y = np.asarray(
        pl.pallas_call(_kernel,
                       out_shape=jax.ShapeDtypeStruct((8, 256), jnp.float32))(x))
    if np.array_equal(y, np.roll(x, 1, axis=1)):
        return True
    if np.array_equal(y, np.roll(x, -1, axis=1)):
        return False
    raise RuntimeError("unexpected pltpu.roll semantics")


# ----------------------------------------------------------------------------
# Fused Pallas kernel: whole BottleneckCSP for one batch element.
# ----------------------------------------------------------------------------
def _csp_kernel(x_ref, w12_ref, b12_ref, taps_ref, w3_ref, b3_ref, w4_ref,
                b4_ref, o_ref, *, H, W, n, roll_is_jnp):
    HW = H * W
    x = x_ref[0]                                               # (Cin, HW)

    # conv1 + conv2 (BN folded): rows [0:hid] = y1, rows [hid:2*hid] = y2.
    state = (jnp.dot(w12_ref[...], x, preferred_element_type=jnp.float32)
             + b12_ref[...])                                   # (2*hid, HW)

    # Static boundary masks for the 9 taps of the padded 3x3 depthwise conv,
    # expressed in the flat lane index (lane i -> pixel (i // W, i % W)).
    flat = jax.lax.broadcasted_iota(jnp.int32, (1, HW), 1)
    hh = flat // W
    ww = flat % W
    masks = []
    for dh, dw in _OFFSETS:
        valid = ((hh + dh >= 0) & (hh + dh < H) &
                 (ww + dw >= 0) & (ww + dw < W))
        masks.append(valid.astype(jnp.float32))                # (1, HW)

    # n x conv3: depthwise 3x3 via masked lane shifts + folded pointwise matmul.
    # The y2 half of `state` passes through untouched (identity taps/weights).
    for _ in range(n):
        acc = jnp.zeros_like(state)
        for t, (dh, dw) in enumerate(_OFFSETS):
            s = dh * W + dw                                    # flat lane offset
            if s == 0:
                shifted = state
            else:
                amt = (-s) % HW if roll_is_jnp else s % HW
                # shifted[:, i] == state[:, i + s]  (wrap-around is masked off)
                shifted = pltpu.roll(state, amt, axis=1)
            acc = acc + shifted * (masks[t] * taps_ref[t])     # (1,HW)*(2h,1)
        state = (jnp.dot(w3_ref[...], acc, preferred_element_type=jnp.float32)
                 + b3_ref[...])

    # conv4 on the (never materialized) concat: state already holds [y1; y2].
    out = (jnp.dot(w4_ref[...], state, preferred_element_type=jnp.float32)
           + b4_ref[...])                                      # (Cout, HW)
    o_ref[0] = out.astype(o_ref.dtype)


def _const_spec(shape):
    nd = len(shape)
    return pl.BlockSpec(shape, lambda b: (0,) * nd)


# ----------------------------------------------------------------------------
# Parameter folding (f32):  dw-scale + BN + pointwise  ->  one weight + bias.
# ----------------------------------------------------------------------------
def fold_csp_params(params):
    p1, p2, p3, p4 = params
    f32 = jnp.float32

    def fold_1x1(p):
        dw_w, s1, b1, pw_w, s2, b2 = p
        w = (dw_w[0] * s1)[:, None] * pw_w * s2[None, :]        # (cin, cout)
        b = (b1 @ pw_w) * s2 + b2                               # (cout,)
        return w.astype(f32), b.astype(f32)

    w1, b1 = fold_1x1(p1)                                       # (Cin, hid)
    w2, b2 = fold_1x1(p2)
    hid = w1.shape[1]

    dw3, s1_3, b1_3, pw3, s2_3, b2_3 = p3
    taps = (dw3 * s1_3[None, :]).astype(f32)                    # (9, hid)
    w3 = (pw3 * s2_3[None, :]).astype(f32)                      # (hid, hid)
    b3 = ((b1_3 @ pw3) * s2_3 + b2_3).astype(f32)               # (hid,)

    w4, b4 = fold_1x1(p4)                                       # (2*hid, Cout)

    # conv1/conv2 stacked -> one (2*hid, Cin) transposed weight + bias column.
    w12t = jnp.concatenate([w1.T, w2.T], axis=0)                # (2*hid, Cin)
    b12c = jnp.concatenate([b1, b2], axis=0)[:, None]           # (2*hid, 1)

    # conv3 extended to act as identity on the y2 half of the stacked state.
    taps_ext = jnp.zeros((9, 2 * hid), f32)
    taps_ext = taps_ext.at[:, :hid].set(taps)
    taps_ext = taps_ext.at[4, hid:].set(1.0)                    # center tap = identity
    taps_ext = taps_ext[:, :, None]                             # (9, 2*hid, 1)

    w3ext = jnp.zeros((2 * hid, 2 * hid), f32)
    w3ext = w3ext.at[:hid, :hid].set(w3.T)
    w3ext = w3ext.at[hid:, hid:].set(jnp.eye(hid, dtype=f32))
    b3ext = jnp.concatenate([b3, jnp.zeros((hid,), f32)])[:, None]   # (2*hid, 1)

    w4t = w4.T                                                  # (Cout, 2*hid)
    b4c = b4[:, None]                                           # (Cout, 1)
    return (w12t, b12c, taps_ext, w3ext, b3ext, w4t, b4c)


# ----------------------------------------------------------------------------
# Forward pass (Pallas)
# ----------------------------------------------------------------------------
@functools.partial(jax.jit, static_argnames=("n", "roll_is_jnp"))
def _csp_forward_impl(x_nchw, params, *, n, roll_is_jnp):
    N, Cin, H, W = x_nchw.shape
    HW = H * W
    w12t, b12c, taps_ext, w3ext, b3ext, w4t, b4c = fold_csp_params(params)
    Cout = w4t.shape[0]

    # NCHW -> (N, C, H*W): pure reshape, channels stay major, lanes = H*W.
    x_flat = x_nchw.reshape(N, Cin, HW).astype(jnp.float32)

    kernel = functools.partial(_csp_kernel, H=H, W=W, n=n,
                               roll_is_jnp=roll_is_jnp)

    out_flat = pl.pallas_call(
        kernel,
        out_shape=jax.ShapeDtypeStruct((N, Cout, HW), jnp.float32),
        grid=(N,),
        in_specs=[pl.BlockSpec((1, Cin, HW), lambda b: (b, 0, 0)),
                  _const_spec(w12t.shape), _const_spec(b12c.shape),
                  _const_spec(taps_ext.shape),
                  _const_spec(w3ext.shape), _const_spec(b3ext.shape),
                  _const_spec(w4t.shape), _const_spec(b4c.shape)],
        out_specs=pl.BlockSpec((1, Cout, HW), lambda b: (b, 0, 0)),
        compiler_params=pltpu.CompilerParams(
            dimension_semantics=("parallel",)),
    )(x_flat, w12t, b12c, taps_ext, w3ext, b3ext, w4t, b4c)

    return out_flat.reshape(N, Cout, H, W)


def bottleneck_csp_forward(x_nchw, params, n=1):
    return _csp_forward_impl(x_nchw, params, n=n,
                             roll_is_jnp=_roll_matches_jnp())


# ----------------------------------------------------------------------------
# Parameter init (deterministic, synthetic) + eval-mode BN folding
# ----------------------------------------------------------------------------
def _fold_bn(gamma, beta, mean, var):
    scale = gamma / jnp.sqrt(var + EPS)
    bias = beta - mean * scale
    return scale, bias


def init_conv_block(key, cin, cout, k):
    """Params for: depthwise KxK conv -> BN -> 1x1 pointwise conv -> BN."""
    ks = jax.random.split(key, 10)
    dw_w = 0.3 * jax.random.normal(ks[0], (k * k, cin), jnp.float32)
    g1 = 1.0 + 0.1 * jax.random.normal(ks[1], (cin,), jnp.float32)
    be1 = 0.1 * jax.random.normal(ks[2], (cin,), jnp.float32)
    m1 = 0.1 * jax.random.normal(ks[3], (cin,), jnp.float32)
    v1 = jax.random.uniform(ks[4], (cin,), jnp.float32, 0.5, 1.5)
    pw_w = jax.random.normal(ks[5], (cin, cout), jnp.float32) / np.sqrt(cin)
    g2 = 1.0 + 0.1 * jax.random.normal(ks[6], (cout,), jnp.float32)
    be2 = 0.1 * jax.random.normal(ks[7], (cout,), jnp.float32)
    m2 = 0.1 * jax.random.normal(ks[8], (cout,), jnp.float32)
    v2 = jax.random.uniform(ks[9], (cout,), jnp.float32, 0.5, 1.5)
    s1, b1 = _fold_bn(g1, be1, m1, v1)
    s2, b2 = _fold_bn(g2, be2, m2, v2)
    return (dw_w, s1, b1, pw_w, s2, b2)


def init_bottleneck_csp(key, in_ch, out_ch):
    hid = out_ch // 2
    k1, k2, k3, k4 = jax.random.split(key, 4)
    return (init_conv_block(k1, in_ch, hid, 1),
            init_conv_block(k2, in_ch, hid, 1),
            init_conv_block(k3, hid, hid, 3),
            init_conv_block(k4, 2 * hid, out_ch, 1))


# ----------------------------------------------------------------------------
# Pure-JAX reference (mirrors the PyTorch module, unfolded)
# ----------------------------------------------------------------------------
def _ref_block(x, dw_w, s1, b1, pw_w, s2, b2, k):
    if k == 1:
        t = x * dw_w[0]
    else:
        xp = jnp.pad(x, ((0, 0), (1, 1), (1, 1), (0, 0)))
        H, W = x.shape[1], x.shape[2]
        t = jnp.zeros_like(x)
        for dh in range(3):
            for dw in range(3):
                t = t + xp[:, dh:dh + H, dw:dw + W, :] * dw_w[dh * 3 + dw]
    t = t * s1 + b1
    t2 = jnp.einsum("nhwc,cd->nhwd", t, pw_w)
    return t2 * s2 + b2


def bottleneck_csp_reference(x_nchw, params, n=1):
    x = jnp.transpose(x_nchw, (0, 2, 3, 1)).astype(jnp.float32)
    p1, p2, p3, p4 = params
    y1 = _ref_block(x, *p1, k=1)
    y2 = _ref_block(x, *p2, k=1)
    for _ in range(n):
        y1 = _ref_block(y1, *p3, k=3)
    cat = jnp.concatenate([y1, y2], axis=-1)
    out = _ref_block(cat, *p4, k=1)
    return jnp.transpose(out, (0, 3, 1, 2))


# ----------------------------------------------------------------------------
if __name__ == "__main__":
    key = jax.random.PRNGKey(0)
    kx, kp = jax.random.split(key)

    N, Cin, H, W = 2, 4, 16, 16
    Cout, n_reps = 8, 1

    x = jax.random.normal(kx, (N, Cin, H, W), jnp.float32)   # NCHW like PyTorch
    params = init_bottleneck_csp(kp, Cin, Cout)

    out = bottleneck_csp_forward(x, params, n_reps)
    out = jax.block_until_ready(out)
    assert out.shape == (N, Cout, H, W), out.shape

    ref = bottleneck_csp_reference(x, params, n_reps)
    np.testing.assert_allclose(np.asarray(out), np.asarray(ref),
                               rtol=1e-4, atol=1e-4)

    print("KERNEL_OK")
</pallas_src>

<mosaic_0001>
module attributes {stable_mosaic.version = 11 : i64} {
  func.func @_kernel(%arg0: memref<8x256xf32, #tpu.memory_space<vmem>>, %arg1: memref<8x256xf32, #tpu.memory_space<vmem>>) attributes {dimension_semantics = [], scalar_prefetch = 0 : i64, scratch_operands = 0 : i64, tpu.core_type = #tpu.core_type<tc>} {
    %c0 = arith.constant 0 : index
    %c0_0 = arith.constant 0 : index
    %0 = vector.load %arg0[%c0, %c0_0] : memref<8x256xf32, #tpu.memory_space<vmem>>, vector<8x256xf32>
    %c1_i32 = arith.constant 1 : i32
    %1 = tpu.dynamic_rotate %0 by %c1_i32 dim 1 : vector<8x256xf32>, i32 -> vector<8x256xf32>
    %c0_1 = arith.constant 0 : index
    %c0_2 = arith.constant 0 : index
    %2 = vector.load %arg1[%c0_1, %c0_2] : memref<8x256xf32, #tpu.memory_space<vmem>>, vector<8x256xf32>
    tpu.vector_store %arg1[%c0_1, %c0_2], %1 {strides = array<i32>} : memref<8x256xf32, #tpu.memory_space<vmem>>, vector<8x256xf32>,
    return
  }
}

</mosaic_0001>

<bundles_post_ra>
// kernel: tpu_custom_call.1
= control target key start
LH: loop header
LB: loop body
LE: loop exit
PB: predicated region body
PF: predicated region fallthrough
CT: control target
= control target key end

     0   :  { %6 = vsyncpa [#allocation3], 0  ;;  %s137_s0 = inlined_call_operand.hbm [shape: f32[8,256], index: 0, kind: input, shape index: {}]   ;;  %s138_s1 = inlined_call_operand.hbm [shape: f32[8,256], index: 1, kind: output, shape index: {}]  }
   0x1   :  { %7 = vsyncpa [#allocation4], 0  ;;  %s100_s6 = smov [#allocation2]   ;;  %s52_s10 = scalar_lea.hbm %s137_s0, 256 }
   0x2   :  { %s14_s7 = sshll.u32 %s100_s6, 4  ;;  %p53_p0 = scmp.ne.s32.totalorder %s137_s0, %s52_s10  ;;  %s15_s7 = int_to_ptr.vmem [resolvable:$true] %s14_s7 }
   0x3   :  { %p56_p1 = scmp.lt.u32.totalorder %s52_s10, %s137_s0 }
   0x5   :  { %p58_p2 = pnand %p56_p1, %p53_p0 }
   0x7   :  { %61 = shalt.err (!%p58_p2)
}
   0x8   :  { %s62_s15 = scalar_lea.vmem %s15_s7, 256  ;;  %p67_p4 = scmp.lt.s32.totalorder %s15_s7, %s15_s7 }
   0x9   :  { %p63_p3 = scmp.ne.s32.totalorder %s15_s7, %s62_s15  ;;  %p68_p5 = scmp.lt.s32.totalorder %s62_s15, %s62_s15 }
   0xb   :  { %p69_p6 = por %p68_p5, %p67_p4 }
   0xd   :  { %p70_p7 = pnand %p69_p6, %p63_p3 }
   0xf   :  { %73 = shalt.err (!%p70_p7)
}
  0x10   :  { %17 = dma.hbm_to_vmem [thread:$0]  %s137_s0, 256, %s15_s7, [#allocation3]  }
  0x11   :  { %96 = dma.done.wait [#allocation3], 256  }
  0x12   :  { %97 = vsyncadd [#allocation3], 4294967040  ;;  %v21_v0 = vld [vmem:[#allocation2] sm:$0xff]  ;;  %s101_s18 = smov 1   ;;  %v22_v1 = vld [vmem:[#allocation2 + $0x8] sm:$0xff]  ;;  %v27_v2 = vlaneseq  ;;  %s102_s19 = smov [#allocation5]  }
  0x13   :  { %23 = vrot.lane.b32.xlu0 %v21_v0, %s101_s18  ;;  %s40_s20 = sshll.u32 %s102_s19, 4  ;;  %s41_s20 = int_to_ptr.vmem [resolvable:$true] %s40_s20 }
  0x14   :  { %v28_v3 = vand.u32 127, %v27_v2  ;;  %s74_s0 = scalar_lea.vmem %s41_s20, 256  ;;  %p79_p9 = scmp.lt.s32.totalorder %s41_s20, %s41_s20 }
  0x15   :  { %p75_p8 = scmp.ne.s32.totalorder %s41_s20, %s74_s0  ;;  %p80_p10 = scmp.lt.s32.totalorder %s74_s0, %s74_s0 }
  0x16   :  { %vm29_vm0 = vcmp.lt.s32.totalorder %v28_v3, 1 }
  0x17   :  { %25 = vrot.lane.b32.xlu0 %v22_v1, %s101_s18  ;;  %p81_p11 = por %p80_p10, %p79_p9 }
  0x19   :  { %p82_p12 = pnand %p81_p11, %p75_p8 }
  0x85   :  { %v24_v4 = vpop.permute.xlu0 %23 }
  0x89   :  { %v26_v5 = vpop.permute.xlu0 %25 }
  0x8a   :  { %v30_v6 = vsel %vm29_vm0, %v24_v4, %v26_v5  ;;  %v31_v7 = vsel %vm29_vm0, %v26_v5, %v24_v4 }
  0x8b   :  { %32 = vst [vmem:[#allocation5] sm:$0xff] %v31_v7  ;;  %33 = vst [vmem:[#allocation5 + $0x8] sm:$0xff] %v30_v6 }
  0x8c   :  { %85 = shalt.err (!%p82_p12)
}
  0x8d   :  { %s86_s23 = scalar_lea.hbm %s138_s1, 256 }
  0x8e   :  { %p87_p13 = scmp.ne.s32.totalorder %s138_s1, %s86_s23  ;;  %p90_p0 = scmp.lt.u32.totalorder %s86_s23, %s138_s1 }
  0x90   :  { %p92_p1 = pnand %p90_p0, %p87_p13 }
  0x92   :  { %95 = shalt.err (!%p92_p1)
}
  0x93   :  { %43 = dma.vmem_to_hbm [thread:$0]  %s41_s20, 256, %s138_s1, [#allocation4]  }
  0x94   :  { %98 = dma.done.wait [#allocation4], 256  }
  0x95   :  { %99 = vsyncadd [#allocation4], 4294967040 }
  0x96   :  { %47 = vsyncpa [#allocation3], 1 }
  0x97   :  { %48 = vsyncpa [#allocation4], 1 }

</bundles_post_ra>
